<compile_context>
chip_gen: v7x
topology: tpu7x:2x2x1
jax: 0.10.0
libtpu: 0.0.40
codegen_flags: <defaults>
</compile_context>

<pallas_src>
import math

import jax
import jax.numpy as jnp
from jax.experimental import pallas as pl
from jax.experimental.pallas import tpu as pltpu


# ----------------------------- Pallas kernel -------------------------------

def noisy_linear_kernel(x_ref, wmu_ref, wsig_ref, eps_in_ref, eps_out_ref,
                        bias_ref, o_ref, acc_mu_ref, acc_sig_ref):
    k = pl.program_id(2)

    @pl.when(k == 0)
    def _():
        acc_mu_ref[...] = jnp.zeros_like(acc_mu_ref)
        acc_sig_ref[...] = jnp.zeros_like(acc_sig_ref)

    x = x_ref[...]                                       # [tm, tk] bf16
    # mu path: canonical [tm,tk] @ [tk,tn] MXU matmul, f32 accumulation.
    acc_mu_ref[...] += jnp.dot(x, wmu_ref[...],
                               preferred_element_type=jnp.float32)
    # sigma path: scale x rows by eps_in ((1,tk) sublane broadcast), then matmul.
    x_eps = x * eps_in_ref[...]
    acc_sig_ref[...] += jnp.dot(x_eps, wsig_ref[...],
                                preferred_element_type=jnp.float32)

    @pl.when(k == pl.num_programs(2) - 1)
    def _():
        o_ref[...] = (acc_mu_ref[...]
                      + acc_sig_ref[...] * eps_out_ref[...]
                      + bias_ref[...]).astype(o_ref.dtype)


# ------------------------------- helpers ------------------------------------

def _round_up(x, m):
    return ((x + m - 1) // m) * m


def _pick_tile(total, desired, mult):
    """Largest multiple of `mult` that is <= desired and divides `total`
    (total is assumed to be a multiple of `mult`)."""
    t = min(desired, total)
    t = max(mult, (t // mult) * mult)
    while total % t != 0:
        t -= mult
    return t


# --------------------------- parameter prep ---------------------------------

def prepare_noisy_linear_params(weight_mu, weight_sigma, *,
                                weight_dtype=jnp.bfloat16,
                                max_tk=1024, max_tn=512):
    """One-time layout pass: K-major, 128-padded, bf16 weight storage.
    Do this at init (canonical param layout), NOT per forward call."""
    N, K = weight_mu.shape
    Kp = _round_up(K, 128)
    Np = _round_up(N, 128)
    tk = _pick_tile(Kp, max_tk, 128)
    tn = _pick_tile(Np, max_tn, 128)
    wmu_t = jnp.pad(weight_mu.T, ((0, Kp - K), (0, Np - N))).astype(weight_dtype)
    wsig_t = jnp.pad(weight_sigma.T, ((0, Kp - K), (0, Np - N))).astype(weight_dtype)
    return dict(wmu_t=wmu_t, wsig_t=wsig_t, K=K, N=N, Kp=Kp, Np=Np, tk=tk, tn=tn)


# ------------------------------- forward ------------------------------------

def noisy_linear_forward(x, params, bias_mu, bias_sigma, in_noise, out_noise,
                         *, tm=None, tk=None, tn=None,
                         compute_dtype=jnp.bfloat16, out_dtype=None,
                         use_pallas=None):
    """x: [B, in]. params: from prepare_noisy_linear_params. bias_*: [out].
    in_noise: [in], out_noise: [out] (already sign*sqrt scaled)."""
    B, K = x.shape
    assert K == params["K"]
    N, Kp, Np = params["N"], params["Kp"], params["Np"]
    if out_dtype is None:
        out_dtype = x.dtype

    if use_pallas is None:
        # Tiny layers: XLA's fused GEMM+elementwise beats a padded Pallas launch.
        use_pallas = (Kp * Np >= 128 * 1024) or (B * Kp * Np >= (1 << 22))

    if not use_pallas:
        wmu = params["wmu_t"][:K, :N].astype(jnp.float32)
        wsig = params["wsig_t"][:K, :N].astype(jnp.float32)
        b_eff = bias_mu + bias_sigma * out_noise
        y = (x @ wmu
             + ((x * in_noise[None, :]) @ wsig) * out_noise[None, :]
             + b_eff[None, :])
        return y.astype(out_dtype)

    # ------------------------- tile selection -------------------------------
    tk = params["tk"] if tk is None else _pick_tile(Kp, _round_up(tk, 128), 128)
    tn = params["tn"] if tn is None else _pick_tile(Np, _round_up(tn, 128), 128)

    Mp = _round_up(B, 8)
    if tm is None:
        # Stream the weights from HBM once: grow tm toward the full batch ...
        tm = _pick_tile(Mp, 512, 8)
        # ... but keep >= 2 blocks on a parallel axis so both v7x TCs get work.
        if (Mp // tm) * (Np // tn) < 2 and Mp >= 16:
            tm = _pick_tile(Mp, max(8, tm // 2), 8)
    else:
        tm = _round_up(tm, 8)
        Mp = _round_up(B, tm)

    grid = (Mp // tm, Np // tn, Kp // tk)

    # ------------------------- per-call operands ----------------------------
    x_p = jnp.pad(x.astype(compute_dtype), ((0, Mp - B), (0, Kp - K)))
    eps_in = jnp.pad(in_noise.astype(compute_dtype).reshape(1, K),
                     ((0, 0), (0, Kp - K)))
    eps_out = jnp.pad(out_noise.astype(jnp.float32).reshape(1, N),
                      ((0, 0), (0, Np - N)))
    b_eff = (bias_mu.astype(jnp.float32)
             + bias_sigma.astype(jnp.float32) * out_noise.astype(jnp.float32))
    b_eff = jnp.pad(b_eff.reshape(1, N), ((0, 0), (0, Np - N)))

    # ------------------------- VMEM budget -----------------------------------
    w_bytes = jnp.dtype(params["wmu_t"].dtype).itemsize
    x_bytes = jnp.dtype(compute_dtype).itemsize
    o_bytes = jnp.dtype(out_dtype).itemsize
    est = (2 * (tm * tk * x_bytes + 2 * tk * tn * w_bytes)   # double-buffered inputs
           + 2 * tm * tn * o_bytes                           # double-buffered output
           + 2 * tm * tn * 4                                 # f32 accumulators
           + 4 * (tk * x_bytes + 2 * tn * 4))                # eps/bias rows
    vmem_limit = int(min(max(32 << 20, 2 * est), 64 << 20))

    out_p = pl.pallas_call(
        noisy_linear_kernel,
        out_shape=jax.ShapeDtypeStruct((Mp, Np), out_dtype),
        grid_spec=pltpu.PrefetchScalarGridSpec(
            num_scalar_prefetch=0,
            grid=grid,
            in_specs=[
                pl.BlockSpec((tm, tk), lambda i, j, k: (i, k)),   # x (bf16)
                pl.BlockSpec((tk, tn), lambda i, j, k: (k, j)),   # weight_mu^T (bf16)
                pl.BlockSpec((tk, tn), lambda i, j, k: (k, j)),   # weight_sigma^T (bf16)
                pl.BlockSpec((1, tk), lambda i, j, k: (0, k)),    # eps_in row
                pl.BlockSpec((1, tn), lambda i, j, k: (0, j)),    # eps_out row
                pl.BlockSpec((1, tn), lambda i, j, k: (0, j)),    # b_eff row
            ],
            out_specs=pl.BlockSpec((tm, tn), lambda i, j, k: (i, j)),
            scratch_shapes=[pltpu.VMEM((tm, tn), jnp.float32),
                            pltpu.VMEM((tm, tn), jnp.float32)],
        ),
        compiler_params=pltpu.CompilerParams(
            dimension_semantics=("parallel", "parallel", "arbitrary"),
            vmem_limit_bytes=vmem_limit),
    )(x_p, params["wmu_t"], params["wsig_t"], eps_in, eps_out, b_eff)

    return out_p[:B, :N]


# --------------------------- plain-JAX glue ---------------------------------
# TODO(synk): noise sampling / orthogonal init / the eval-mode (no-noise) branch
# are ordinary JAX here; only the training-mode linear forward is a kernel.

def scaled_noise(key, size):
    x = jax.random.normal(key, (size,), dtype=jnp.float32)
    return jnp.sign(x) * jnp.sqrt(jnp.abs(x))


def factorized_gaussian_noise(key, in_features, out_features):
    """Returns the two factorized-noise vectors (in_noise, out_noise); the
    [out, in] epsilon outer product is reconstructed algebraically in-kernel."""
    k_in, k_out = jax.random.split(key)
    return scaled_noise(k_in, in_features), scaled_noise(k_out, out_features)


def orthogonal_init(key, out_features, in_features, gain):
    a = jax.random.normal(key, (max(out_features, in_features),
                                min(out_features, in_features)),
                          dtype=jnp.float32)
    q, r = jnp.linalg.qr(a)
    q = q * jnp.sign(jnp.diag(r))[None, :]
    if out_features < in_features:
        w = q.T[:out_features, :in_features]
    else:
        w = q[:out_features, :in_features]
    return gain * w


# ------------------------------- main ---------------------------------------

if __name__ == "__main__":
    in_features = 512
    out_features = 256
    batch = 64
    initial_std_dev = 0.4

    root = jax.random.PRNGKey(0)
    k_w, k_x, k_noise = jax.random.split(root, 3)

    # Parameter init (mirrors reset_weights()).
    weight_mu = orthogonal_init(k_w, out_features, in_features, math.sqrt(2.0))
    weight_sigma = jnp.full((out_features, in_features),
                            initial_std_dev / math.sqrt(in_features),
                            dtype=jnp.float32)
    bias_mu = jnp.zeros((out_features,), dtype=jnp.float32)
    bias_sigma = jnp.full((out_features,),
                          initial_std_dev / math.sqrt(out_features),
                          dtype=jnp.float32)

    # One-time canonical layout (K-major, padded, bf16).
    params = prepare_noisy_linear_params(weight_mu, weight_sigma)

    # Input and factorized noise (training mode, factorized_noise=True).
    x = jax.random.normal(k_x, (batch, in_features), dtype=jnp.float32)
    in_noise, out_noise = factorized_gaussian_noise(k_noise, in_features,
                                                    out_features)

    # Pure-JAX f32 reference (kernel uses bf16 MXU inputs -> looser tolerance).
    w_eff = weight_mu + weight_sigma * jnp.outer(out_noise, in_noise)
    b_eff_ref = bias_mu + bias_sigma * out_noise
    ref = x @ w_eff.T + b_eff_ref[None, :]

    # 1) Explicit small tiles -> multi-block grid (2, 2, 4), exercises the
    #    K-accumulation / init / finalize path.
    out1 = noisy_linear_forward(x, params, bias_mu, bias_sigma,
                                in_noise, out_noise,
                                tm=32, tk=128, tn=128, use_pallas=True)
    out1 = jax.block_until_ready(out1)
    assert out1.shape == (batch, out_features)
    assert jnp.allclose(out1, ref, atol=1e-1, rtol=5e-2), (
        float(jnp.max(jnp.abs(out1 - ref))))

    # 2) Auto-tiled path (tm grown toward the batch, occupancy-adjusted).
    out2 = noisy_linear_forward(x, params, bias_mu, bias_sigma,
                                in_noise, out_noise, use_pallas=True)
    out2 = jax.block_until_ready(out2)
    assert jnp.allclose(out2, ref, atol=1e-1, rtol=5e-2), (
        float(jnp.max(jnp.abs(out2 - ref))))

    print("KERNEL_OK")
</pallas_src>

<mosaic_0001>
module attributes {stable_mosaic.version = 11 : i64} {
  func.func @noisy_linear_kernel(%arg0: i32, %arg1: i32, %arg2: i32, %arg3: memref<32x128xbf16, #tpu.memory_space<vmem>>, %arg4: memref<128x128xbf16, #tpu.memory_space<vmem>>, %arg5: memref<128x128xbf16, #tpu.memory_space<vmem>>, %arg6: memref<1x128xbf16, #tpu.memory_space<vmem>>, %arg7: memref<1x128xf32, #tpu.memory_space<vmem>>, %arg8: memref<1x128xf32, #tpu.memory_space<vmem>>, %arg9: memref<32x128xf32, #tpu.memory_space<vmem>>, %arg10: memref<32x128xf32, #tpu.memory_space<vmem>>, %arg11: memref<32x128xf32, #tpu.memory_space<vmem>>) attributes {dimension_semantics = [#tpu.dimension_semantics<parallel>, #tpu.dimension_semantics<parallel>, #tpu.dimension_semantics<arbitrary>], iteration_bounds = array<i64: 2, 2, 4>, scalar_prefetch = 0 : i64, scratch_operands = 2 : i64, tpu.core_type = #tpu.core_type<tc>, window_params = [{transform_indices = @transform_0, window_bounds = array<i64: 32, 128>}, {transform_indices = @transform_1, window_bounds = array<i64: 128, 128>}, {transform_indices = @transform_2, window_bounds = array<i64: 128, 128>}, {transform_indices = @transform_3, window_bounds = array<i64: 1, 128>}, {transform_indices = @transform_4, window_bounds = array<i64: 1, 128>}, {transform_indices = @transform_5, window_bounds = array<i64: 1, 128>}, {transform_indices = @transform_6, window_bounds = array<i64: 32, 128>}]} {
    %c0_i32 = arith.constant 0 : i32
    %0 = arith.cmpi eq, %arg2, %c0_i32 : i32
    %1 = arith.extui %0 : i1 to i32
    %c0_i32_0 = arith.constant 0 : i32
    %2 = arith.cmpi ne, %1, %c0_i32_0 : i32
    scf.if %2 {
      %cst_18 = arith.constant 0.000000e+00 : f32
      %20 = vector.broadcast %cst_18 : f32 to vector<32x128xf32>
      %c0_19 = arith.constant 0 : index
      %c0_20 = arith.constant 0 : index
      %21 = vector.load %arg10[%c0_19, %c0_20] : memref<32x128xf32, #tpu.memory_space<vmem>>, vector<32x128xf32>
      tpu.vector_store %arg10[%c0_19, %c0_20], %20 {strides = array<i32>} : memref<32x128xf32, #tpu.memory_space<vmem>>, vector<32x128xf32>,
      %cst_21 = arith.constant 0.000000e+00 : f32
      %22 = vector.broadcast %cst_21 : f32 to vector<32x128xf32>
      %c0_22 = arith.constant 0 : index
      %c0_23 = arith.constant 0 : index
      %23 = vector.load %arg11[%c0_22, %c0_23] : memref<32x128xf32, #tpu.memory_space<vmem>>, vector<32x128xf32>
      tpu.vector_store %arg11[%c0_22, %c0_23], %22 {strides = array<i32>} : memref<32x128xf32, #tpu.memory_space<vmem>>, vector<32x128xf32>,
    } else {
    }
    %c0 = arith.constant 0 : index
    %c0_1 = arith.constant 0 : index
    %3 = vector.load %arg3[%c0, %c0_1] : memref<32x128xbf16, #tpu.memory_space<vmem>>, vector<32x128xbf16>
    %c0_2 = arith.constant 0 : index
    %c0_3 = arith.constant 0 : index
    %4 = vector.load %arg10[%c0_2, %c0_3] : memref<32x128xf32, #tpu.memory_space<vmem>>, vector<32x128xf32>
    %c0_4 = arith.constant 0 : index
    %c0_5 = arith.constant 0 : index
    %5 = vector.load %arg4[%c0_4, %c0_5] : memref<128x128xbf16, #tpu.memory_space<vmem>>, vector<128x128xbf16>
    %cst = arith.constant dense<0.000000e+00> : vector<32x128xf32>
    %6 = tpu.matmul %3, %5, %cst {dimension_numbers = #tpu.dot_dimension_numbers<[1], [0], [0], [1], [0, 0, 1, 1], [], []>} : vector<32x128xbf16>, vector<128x128xbf16>, vector<32x128xf32> -> vector<32x128xf32>
    %7 = arith.addf %4, %6 : vector<32x128xf32>
    %c0_6 = arith.constant 0 : index
    %c0_7 = arith.constant 0 : index
    %8 = vector.load %arg10[%c0_6, %c0_7] : memref<32x128xf32, #tpu.memory_space<vmem>>, vector<32x128xf32>
    tpu.vector_store %arg10[%c0_6, %c0_7], %7 {strides = array<i32>} : memref<32x128xf32, #tpu.memory_space<vmem>>, vector<32x128xf32>,
    %c0_8 = arith.constant 0 : index
    %c0_9 = arith.constant 0 : index
    %9 = vector.load %arg6[%c0_8, %c0_9] : memref<1x128xbf16, #tpu.memory_space<vmem>>, vector<1x128xbf16>
    %10 = vector.broadcast %9 : vector<1x128xbf16> to vector<32x128xbf16>
    %11 = arith.mulf %3, %10 : vector<32x128xbf16>
    %c0_10 = arith.constant 0 : index
    %c0_11 = arith.constant 0 : index
    %12 = vector.load %arg11[%c0_10, %c0_11] : memref<32x128xf32, #tpu.memory_space<vmem>>, vector<32x128xf32>
    %c0_12 = arith.constant 0 : index
    %c0_13 = arith.constant 0 : index
    %13 = vector.load %arg5[%c0_12, %c0_13] : memref<128x128xbf16, #tpu.memory_space<vmem>>, vector<128x128xbf16>
    %cst_14 = arith.constant dense<0.000000e+00> : vector<32x128xf32>
    %14 = tpu.matmul %11, %13, %cst_14 {dimension_numbers = #tpu.dot_dimension_numbers<[1], [0], [0], [1], [0, 0, 1, 1], [], []>} : vector<32x128xbf16>, vector<128x128xbf16>, vector<32x128xf32> -> vector<32x128xf32>
    %15 = arith.addf %12, %14 : vector<32x128xf32>
    %c0_15 = arith.constant 0 : index
    %c0_16 = arith.constant 0 : index
    %16 = vector.load %arg11[%c0_15, %c0_16] : memref<32x128xf32, #tpu.memory_space<vmem>>, vector<32x128xf32>
    tpu.vector_store %arg11[%c0_15, %c0_16], %15 {strides = array<i32>} : memref<32x128xf32, #tpu.memory_space<vmem>>, vector<32x128xf32>,
    %c3_i32 = arith.constant 3 : i32
    %17 = arith.cmpi eq, %arg2, %c3_i32 : i32
    %18 = arith.extui %17 : i1 to i32
    %c0_i32_17 = arith.constant 0 : i32
    %19 = arith.cmpi ne, %18, %c0_i32_17 : i32
    scf.if %19 {
      %c0_18 = arith.constant 0 : index
      %c0_19 = arith.constant 0 : index
      %20 = vector.load %arg10[%c0_18, %c0_19] : memref<32x128xf32, #tpu.memory_space<vmem>>, vector<32x128xf32>
      %c0_20 = arith.constant 0 : index
      %c0_21 = arith.constant 0 : index
      %21 = vector.load %arg11[%c0_20, %c0_21] : memref<32x128xf32, #tpu.memory_space<vmem>>, vector<32x128xf32>
      %c0_22 = arith.constant 0 : index
      %c0_23 = arith.constant 0 : index
      %22 = vector.load %arg7[%c0_22, %c0_23] : memref<1x128xf32, #tpu.memory_space<vmem>>, vector<1x128xf32>
      %23 = vector.broadcast %22 : vector<1x128xf32> to vector<32x128xf32>
      %24 = arith.mulf %21, %23 : vector<32x128xf32>
      %25 = arith.addf %20, %24 : vector<32x128xf32>
      %c0_24 = arith.constant 0 : index
      %c0_25 = arith.constant 0 : index
      %26 = vector.load %arg8[%c0_24, %c0_25] : memref<1x128xf32, #tpu.memory_space<vmem>>, vector<1x128xf32>
      %27 = vector.broadcast %26 : vector<1x128xf32> to vector<32x128xf32>
      %28 = arith.addf %25, %27 : vector<32x128xf32>
      %c0_26 = arith.constant 0 : index
      %c0_27 = arith.constant 0 : index
      %29 = vector.load %arg9[%c0_26, %c0_27] : memref<32x128xf32, #tpu.memory_space<vmem>>, vector<32x128xf32>
      tpu.vector_store %arg9[%c0_26, %c0_27], %28 {strides = array<i32>} : memref<32x128xf32, #tpu.memory_space<vmem>>, vector<32x128xf32>,
    } else {
    }
    return
  }
  func.func @transform_0(%arg0: i32, %arg1: i32, %arg2: i32) -> (i32, i32) {
    %c0_i32 = arith.constant 0 : i32
    return %arg0, %arg2 : i32, i32
  }
  func.func @transform_1(%arg0: i32, %arg1: i32, %arg2: i32) -> (i32, i32) {
    %c0_i32 = arith.constant 0 : i32
    return %arg2, %arg1 : i32, i32
  }
  func.func @transform_2(%arg0: i32, %arg1: i32, %arg2: i32) -> (i32, i32) {
    %c0_i32 = arith.constant 0 : i32
    return %arg2, %arg1 : i32, i32
  }
  func.func @transform_3(%arg0: i32, %arg1: i32, %arg2: i32) -> (i32, i32) {
    %c0_i32 = arith.constant 0 : i32
    %c0_i32_0 = arith.constant 0 : i32
    return %c0_i32, %arg2 : i32, i32
  }
  func.func @transform_4(%arg0: i32, %arg1: i32, %arg2: i32) -> (i32, i32) {
    %c0_i32 = arith.constant 0 : i32
    %c0_i32_0 = arith.constant 0 : i32
    return %c0_i32, %arg1 : i32, i32
  }
  func.func @transform_5(%arg0: i32, %arg1: i32, %arg2: i32) -> (i32, i32) {
    %c0_i32 = arith.constant 0 : i32
    %c0_i32_0 = arith.constant 0 : i32
    return %c0_i32, %arg1 : i32, i32
  }
  func.func @transform_6(%arg0: i32, %arg1: i32, %arg2: i32) -> (i32, i32) {
    %c0_i32 = arith.constant 0 : i32
    return %arg0, %arg1 : i32, i32
  }
}

</mosaic_0001>

<bundles_post_ra>
// kernel: tpu_custom_call.1
= control target key start
LH: loop header
LB: loop body
LE: loop exit
PB: predicated region body
PF: predicated region fallthrough
CT: control target
= control target key end

     0   :  { %s2058_s0 = inlined_call_operand.hbm [shape: bf16[64,512], index: 0, kind: input, shape index: {}]   ;;  %s2059_s1 = inlined_call_operand.hbm [shape: bf16[512,256], index: 1, kind: input, shape index: {}]   ;;  %s2060_s2 = inlined_call_operand.hbm [shape: bf16[512,256], index: 2, kind: input, shape index: {}]   ;;  %s2061_s3 = inlined_call_operand.vmem [shape: bf16[1,512], index: 3, kind: input, shape index: {}]   ;;  %s2062_s4 = inlined_call_operand.vmem [shape: f32[1,256], index: 4, kind: input, shape index: {}]   ;;  %s2063_s5 = inlined_call_operand.vmem [shape: f32[1,256], index: 5, kind: input, shape index: {}]   ;;  %s2064_s6 = inlined_call_operand.hbm [shape: f32[64,256], index: 6, kind: output, shape index: {}]  }
   0x1   :  { %2095 = sst [smem:[#allocation28_spill]] %s2058_s0 }
   0x2   :  { %2096 = sst [smem:[#allocation29_spill]] %s2059_s1 }
   0x3   :  { %2097 = sst [smem:[#allocation30_spill]] %s2060_s2 }
   0x4   :  { %2098 = sst [smem:[#allocation31_spill]] %s2061_s3 }
   0x5   :  { %2099 = sst [smem:[#allocation32_spill]] %s2062_s4 }
   0x6   :  { %2100 = sst [smem:[#allocation33_spill]] %s2063_s5 }
   0x7   :  { %2101 = sst [smem:[#allocation34_spill]] %s2064_s6 }
   0x8   :  { %11 = vsyncpa [#allocation5], 0 }
   0x9   :  { %13 = vsyncpa [#allocation5 + $0x1], 0 }
   0xa   :  { %14 = vsyncpa [#allocation8], 0 }
   0xb   :  { %16 = vsyncpa [#allocation8 + $0x1], 0 }
   0xc   :  { %17 = vsyncpa [#allocation6], 0 }
   0xd   :  { %19 = vsyncpa [#allocation6 + $0x1], 0  ;;  %s1558_s21 = smov 0   ;;  %s1560_s22 = smov 0  }
   0xe   :  { %s1562_s23 = smov 0   ;;  %s1564_s24 = smov 0  }
   0xf   :  { %s1566_s25 = smov 0   ;;  %s1568_s26 = smov 0  }
  0x10   :  { %s1570_s27 = smov 0   ;;  %s1572_s28 = smov 0  }
  0x11   :  { %s1574_s29 = smov 0   ;;  %s1576_s30 = smov 0  }
  0x12   :  { %s1578_s7 = smov 0   ;;  %s1580_s8 = smov 0  }
  0x13   :  { %s1582_s9 = smov 0   ;;  %s1584_s10 = smov 0  }
  0x14   :  { %s1586_s11 = smov 0   ;;  %s1588_s12 = smov 0  }
  0x15 LB: > { %2102 = sst [smem:[#allocation14_spill]] %s1449_s21  ;;  %s37_s13 = sadd.s32 1, %s1497_s9  ;;  %s1509_s12 = sphi %s1588_s12, %s25_s12   ;;  %s1505_s11 = sphi %s1586_s11, %s2181_s11   ;;  %s1501_s10 = sphi %s1584_s10, %s2169_s10   ;;  %s1497_s9 = sphi %s1582_s9, %s2180_s9   ;;  %s1493_s8 = sphi %s1580_s8, %s2179_s8   ;;  %s1489_s7 = sphi %s1578_s7, %s2178_s7   ;;  %s1485_s30 = sphi %s1576_s30, %s2177_s30   ;;  %s1481_s29 = sphi %s1574_s29, %s2176_s29   ;;  %s1477_s28 = sphi %s1572_s28, %s2175_s28   ;;  %s1473_s27 = sphi %s1570_s27, %s2174_s27   ;;  %s1469_s26 = sphi %s1568_s26, %s2166_s26   ;;  %s1465_s25 = sphi %s1566_s25, %s2165_s25   ;;  %s1461_s24 = sphi %s1564_s24, %s2164_s24   ;;  %s1457_s23 = sphi %s1562_s23, %s2173_s23   ;;  %s1453_s22 = sphi %s1560_s22, %s2172_s22   ;;  %s1449_s21 = sphi %s1558_s21, %s2171_s21  }
  0x16   : > { %2103 = sst [smem:[#allocation15_spill]] %s1465_s25  ;;  %p38_p0 = scmp.ge.s32.totalorder %s37_s13, 4 }
  0x17   : > { %2104 = sst [smem:[#allocation16_spill]] %s1469_s26  ;;  %s40_s14 = sadd.s32 1, %s1501_s10 }
  0x18   : > { %2105 = sst [smem:[#allocation17_spill]] %s1485_s30  ;;  %s1639_s15 = sadd.s32 4294967295, %s1509_s12  }
  0x19   : > { %2106 = sst [smem:[#allocation18_spill]] %s1489_s7  ;;  %p2077_p1 = scmp.eq.s32.totalorder %s1509_s12, 0 }
  0x1a   : > { %2107 = sst [smem:[#allocation19_spill]] %s1493_s8  ;;  %s2183_s13 = smov (%p38_p0, %s37_s13), 0 }
  0x1b   : > { %2108 = sst [smem:[#allocation20_spill]] %s1501_s10  ;;  %s2185_s14 = smov (!%p38_p0, %s40_s14), %s1501_s10 }
  0x1c   : > { %2109 = sst [smem:[#allocation21_spill]] %s1639_s15  ;;  %s1649_s16 = ssub.s32 %s1497_s9, %s2183_s13 }
  0x1d   : > { %2110 = sst [smem:[#allocation22_spill]] %s2183_s13  ;;  %p2076_p2 = scmp.eq.s32.totalorder %s1639_s15, 0 }
  0x1e   : > { %p2078_p3 = scmp.ge.s32.totalorder %s2185_s14, 2  ;;  %p88_p4 = scmp.ne.s32.totalorder %s1469_s26, %s1465_s25 }
  0x1f   : > { %s81_s17 = sadd.s32 1, %s1469_s26  ;;  %p94_p5 = scmp.ne.s32.totalorder %s1465_s25, %s1461_s24 }
  0x20   : > { %s1660_s18 = scalar_select %p2078_p3, 0, %s2185_s14  }
  0x21   : > { %p1664_p6 = por %p88_p4, %p2077_p1  ;;  %p1670_p7 = por %p94_p5, %p2076_p2 }
  0x22   : > { %2111 = sst [smem:[#allocation23_spill]] %s1660_s18  ;;  %s1676_s13 = ssub.s32 %s1501_s10, %s1660_s18 }
  0x23   : > { %s2113_s20 = scalar_select %p1670_p7, 1, 0 }
  0x24   : > { %s78_s24 = sor.u32 %s1676_s13, %s1649_s16  ;;  %p2075_p8 = scmp.lt.s32.totalorder %s1509_s12, 16 }
  0x25   : > { %2114 = sst [smem:[#allocation24_spill]] %s2113_s20  ;;  %p79_p9 = scmp.eq.s32.totalorder %s78_s24, 0 }
  0x26   : > { %s275_s6 = sand.u32 1, %s1509_s12   ;;  %s277_s5 = sand.u32 1, %s1469_s26  }
  0x27   : > { %s1683_s8 = scalar_select %p79_p9, %s1469_s26, %s81_s17  }
  0x28   : > { %s1686_s4 = sshll.u32 %s277_s5, 6  ;;  %s1012_s3 = sshll.u32 %s1497_s9, 5 }
  0x29   : > { %2115 = sst [smem:[#allocation25_spill]] %s1683_s8  ;;  %s285_s7 = sadd.s32 %s1501_s10, %s1012_s3 }
  0x2a   : > { %s970_s30 = sshll.u32 %s285_s7, 6  ;;  %s279_s20 = scalar_lea.vmem [#allocation7], %s1686_s4 }
  0x2b   : > { %s288_s25 = sshll.u32 %s279_s20, 4  ;;  %s2116_s1 = sld [smem:[#allocation29_spill]]  ;;  %s1696_s25 = int_to_ptr.vmem [resolvable:$true] %s288_s25 }
  0x2c   : > { %p1702_p10 = pnand %p2075_p8, %p1664_p6  ;;  %s2118_s2 = sld [smem:[#allocation30_spill]] }
  0x2d   : > { %s1712_s17 = scalar_lea.sflag [#allocation8], %s275_s6 }
  0x2e   : > { %p2089_p13 = pneg %p1702_p10 }
  0x31   : > { %s1694_s21 = scalar_lea.hbm %s2116_s1, %s970_s30  ;;  %s1258_s24 = scalar_lea.hbm %s2116_s1, 8192 }
  0x32   : > { %s1710_s0 = scalar_lea.hbm %s2118_s2, %s970_s30  ;;  %s1253_s18 = scalar_lea.hbm %s1694_s21, 1024 }
  0x33   : > { %p1254_p12 = scmp.ne.s32.totalorder %s1694_s21, %s1253_s18  ;;  %p1259_p5 = scmp.lt.u32.totalorder %s1694_s21, %s2116_s1 }
  0x34   : > { %p1260_p6 = scmp.lt.u32.totalorder %s1258_s24, %s1253_s18  ;;  %p1262_p8 = scmp.lt.u32.totalorder %s1253_s18, %s1694_s21 }
  0x35   : > { %p1256_p0 = pnand %p2089_p13, %p1254_p12 }
  0x36   : > { %p1261_p9 = por %p1260_p6, %p1259_p5 }
  0x37   : > { %p1257_p4 = pneg %p1256_p0 }
  0x38   : > { %p1263_p11 = por %p1262_p8, %p1261_p9 }
  0x3a   : > { %p1264_p2 = pnand %p1263_p11, %p1257_p4 }
  0x3c   : > { %1267 = shalt.err (!%p1264_p2)
}
  0x3d   : > { %s1268_s6 = scalar_lea.vmem %s1696_s25, 1024  ;;  %s1511_s30 = smov [#allocation7]  }
  0x3e   : > { %p1269_p12 = scmp.ne.s32.totalorder %s1696_s25, %s1268_s6  ;;  %s1273_s3 = sshll.u32 %s1511_s30, 4  ;;  %s1274_s3 = int_to_ptr.vmem [resolvable:$false] %s1273_s3 }
  0x3f   : > { %s1275_s8 = scalar_lea.vmem %s1274_s3, 2048  ;;  %p1276_p3 = scmp.lt.s32.totalorder %s1696_s25, %s1274_s3 }
  0x40   : > { %p1271_p0 = pnand %p1269_p12, %p2089_p13  ;;  %p1277_p5 = scmp.lt.s32.totalorder %s1275_s8, %s1268_s6 }
  0x42   : > { %p1272_p1 = pneg %p1271_p0  ;;  %p1278_p6 = por %p1277_p5, %p1276_p3 }
  0x44   : > { %p1279_p8 = pnand %p1278_p6, %p1272_p1 }
  0x46   : > { %1282 = shalt.err (!%p1279_p8)
}
  0x47   : > { %s2079_s10 = smov 128   ;;  %s2080_s7 = smov 64  }
  0x48   : > { %s2082_s18 = smov 4   ;;  %s302_s19 = scalar_lea.vmem [#allocation9], %s1686_s4 }
  0x49   : > { %1089 = dma.hbm_to_vmem [thread:$0]  (!%p1702_p10), %s1694_s21, 1024, %s1696_s25, %s1712_s17, %s2079_s10, %s2080_s7, %s2082_s18  }
  0x4a   : > { %s1744_s20 = sshll.u32 %s302_s19, 4  ;;  %p975_p1 = scmp.ge.s32.totalorder %s1509_s12, 1  ;;  %s1820_s20 = int_to_ptr.vmem [resolvable:$true] %s1744_s20 }
  0x4b   : > { %s2119_s24 = sld [smem:[#allocation14_spill]]  ;;  %p337_p2 = scmp.lt.s32.totalorder %s1509_s12, 17 }
  0x4c   : > { %s960_s30 = sadd.s32 4294967294, %s1509_s12   ;;  %s44_s3 = sadd.s32 1, %s1505_s11 }
  0x4d   : > { %p1748_p3 = pnand %p975_p1, %p337_p2  ;;  %p2121_p11 = scmp.ge.s32.totalorder %s2185_s14, 2 }
  0x4e   : > { %s53_s4 = sadd.s32 1, %s1481_s29  ;;  %p60_p4 = scmp.ne.s32.totalorder %s1481_s29, %s1477_s28 }
  0x4f   : > { %s2120_s6 = scalar_select %p1748_p3, 1, 0 }
  0x50   : > { %s2187_s3 = smov (!%p2121_p11, %s44_s3), %s1505_s11  ;;  %p66_p12 = scmp.ne.s32.totalorder %s1477_s28, %s1473_s27 }
  0x51   : > { %p46_p9 = scmp.ge.s32.totalorder %s2187_s3, 2  ;;  %p2122_p0 = scmp.eq.s32.totalorder %s1509_s12, 0 }
  0x52   : > { %s215_s25 = sadd.s32 1, %s1457_s23  ;;  %p2125_p6 = scmp.eq.s32.totalorder %s1639_s15, 0 }
  0x53   : > { %p1764_p5 = por %p2122_p0, %p60_p4  ;;  %s2189_s3 = smov (%p46_p9, %s2187_s3), 0 }
  0x54   : > { %2124 = sst [smem:[#allocation26_spill]] %s2189_s3  ;;  %p1773_p8 = por %p2125_p6, %p66_p12 }
  0x55   : > { %p225_p1 = scmp.ne.s32.totalorder %s1457_s23, %s1453_s22  ;;  %s48_s8 = ssub.s32 %s1505_s11, %s2189_s3 }
  0x56   : > { %s2126_s14 = scalar_select %p1773_p8, 1, 0 }
  0x57   : > { %p231_p2 = scmp.ne.s32.totalorder %s1453_s22, %s2119_s24  ;;  %s50_s27 = sor.u32 %s1649_s16, %s48_s8 }
  0x58   : > { %s212_s19 = sor.u32 %s1676_s13, %s48_s8  ;;  %p51_p11 = scmp.eq.s32.totalorder %s50_s27, 0 }
  0x59   : > { %p213_p4 = scmp.eq.s32.totalorder %s212_s19, 0  ;;  %p2127_p0 = scmp.eq.s32.totalorder %s1639_s15, 15 }
  0x5a   : > { %p232_p12 = scmp.eq.s32.totalorder %s960_s30, 15  ;;  %s252_s13 = sand.u32 1, %s1481_s29  }
  0x5b   : > { %p1787_p9 = por %p2127_p0, %p225_p1  ;;  %s963_s16 = sshll.u32 %s252_s13, 4 }
  0x5c   : > { %s1792_s7 = scalar_select %p51_p11, %s1481_s29, %s53_s4  }
  0x5d   : > { %s2128_s10 = scalar_select %p1787_p9, 1, 0 }
  0x5e   : > { %s1795_s18 = scalar_select %p213_p4, %s1457_s23, %s215_s25  }
  0x5f   : > { %2129 = sst [smem:[#allocation27_spill]] %s2128_s10  ;;  %p1797_p6 = por %p232_p12, %p231_p2 }
  0x60   : > { %s1011_s24 = sshll.u32 %s1505_s11, 4  ;;  %s256_s27 = scalar_lea.vmem [#allocation4], %s963_s16 }
  0x61   : > { %s2130_s1 = scalar_select %p1797_p6, 1, 0 }
  0x62   : > { %s262_s8 = sadd.s32 %s1497_s9, %s1011_s24  ;;  %s265_s19 = sshll.u32 %s256_s27, 4  ;;  %s1804_s19 = int_to_ptr.vmem [resolvable:$true] %s265_s19 }
  0x63   : > { %s966_s3 = sshll.u32 %s262_s8, 6  ;;  %s2131_s30 = sld [smem:[#allocation28_spill]] }
  0x64   : > { %p2133_p1 = scmp.lt.s32.totalorder %s1509_s12, 16  ;;  %s1822_s16 = scalar_lea.sflag [#allocation5], %s252_s13 }
  0x66   : > { %p1815_p2 = pnand %p2133_p1, %p1764_p5 }
  0x68   : > { %p1285_p4 = pneg %p1815_p2 }
  0x69   : > { %s2132_s15 = smov %s2131_s30  ;;  %s1809_s4 = scalar_lea.hbm %s2131_s30, %s966_s3 }
  0x6a   : > { %s1283_s24 = scalar_lea.hbm %s1809_s4, 256  ;;  %s1288_s3 = scalar_lea.hbm %s2132_s15, 2048 }
  0x6b   : > { %p1284_p11 = scmp.ne.s32.totalorder %s1809_s4, %s1283_s24  ;;  %p1289_p5 = scmp.lt.u32.totalorder %s1809_s4, %s2132_s15 }
  0x6c   : > { %p1290_p1 = scmp.lt.u32.totalorder %s1288_s3, %s1283_s24  ;;  %p1292_p6 = scmp.lt.u32.totalorder %s1283_s24, %s1809_s4 }
  0x6d   : > { %p1286_p0 = pnand %p1285_p4, %p1284_p11 }
  0x6e   : > { %p1291_p13 = por %p1290_p1, %p1289_p5 }
  0x6f   : > { %p1287_p12 = pneg %p1286_p0 }
  0x70   : > { %p1293_p9 = por %p1292_p6, %p1291_p13 }
  0x72   : > { %p1294_p7 = pnand %p1293_p9, %p1287_p12 }
  0x74   : > { %1297 = shalt.err (!%p1294_p7)
}
  0x75   : > { %s1298_s13 = scalar_lea.vmem %s1804_s19, 256  ;;  %s1515_s27 = smov [#allocation4]  }
  0x76   : > { %p1299_p11 = scmp.ne.s32.totalorder %s1804_s19, %s1298_s13  ;;  %s1303_s30 = sshll.u32 %s1515_s27, 4  ;;  %s1304_s30 = int_to_ptr.vmem [resolvable:$false] %s1303_s30 }
  0x77   : > { %s1305_s26 = scalar_lea.vmem %s1304_s30, 512  ;;  %p1306_p3 = scmp.lt.s32.totalorder %s1804_s19, %s1304_s30 }
  0x78   : > { %p1301_p0 = pnand %p1299_p11, %p1285_p4  ;;  %p1307_p5 = scmp.lt.s32.totalorder %s1305_s26, %s1298_s13 }
  0x7a   : > { %p1302_p8 = pneg %p1301_p0  ;;  %p1308_p1 = por %p1307_p5, %p1306_p3 }
  0x7c   : > { %p1309_p13 = pnand %p1308_p1, %p1302_p8 }
  0x7e   : > { %1312 = shalt.err (!%p1309_p13)
}
  0x7f   : > { %s1516_s24 = smov 256   ;;  %s2135_s10 = smov 4  }
  0x80   : > { %s2136_s3 = smov 64   ;;  %s1313_s21 = scalar_lea.hbm %s1710_s0, 1024 }
  0x81   : > { %1086 = dma.hbm_to_vmem [thread:$0]  (!%p1815_p2), %s1809_s4, 256, %s1804_s19, %s1822_s16, %s1516_s24, %s2136_s3, %s2135_s10  }
  0x82   : > { %p1314_p7 = scmp.ne.s32.totalorder %s1710_s0, %s1313_s21  ;;  %p2137_p3 = pneg %p1702_p10 }
  0x83   : > { %s1318_s25 = scalar_lea.hbm %s2118_s2, 8192  ;;  %p1319_p6 = scmp.lt.u32.totalorder %s1710_s0, %s2118_s2 }
  0x84   : > { %p1316_p8 = pnand %p1314_p7, %p2137_p3  ;;  %p1320_p4 = scmp.lt.u32.totalorder %s1318_s25, %s1313_s21 }
  0x85   : > { %p1322_p11 = scmp.lt.u32.totalorder %s1313_s21, %s1710_s0 }
  0x86   : > { %p1317_p9 = pneg %p1316_p8  ;;  %p1321_p12 = por %p1320_p4, %p1319_p6 }
  0x88   : > { %p1323_p0 = por %p1322_p11, %p1321_p12 }
  0x8a   : > { %p1324_p5 = pnand %p1323_p0, %p1317_p9 }
  0x8c   : > { %1327 = shalt.err (!%p1324_p5)
}
  0x8d   : > { %s1328_s19 = scalar_lea.vmem %s1820_s20, 1024  ;;  %p2138_p1 = pmov %p2137_p3 }
  0x8e   : > { %p1329_p2 = scmp.ne.s32.totalorder %s1820_s20, %s1328_s19  ;;  %s1517_s4 = smov [#allocation9]  }
  0x8f   : > { %s1333_s16 = sshll.u32 %s1517_s4, 4  ;;  %s1334_s16 = int_to_ptr.vmem [resolvable:$false] %s1333_s16 }
  0x90   : > { %p1331_p13 = pnand %p1329_p2, %p2138_p1  ;;  %s1335_s26 = scalar_lea.vmem %s1334_s16, 2048 }
  0x91   : > { %p1336_p3 = scmp.lt.s32.totalorder %s1820_s20, %s1334_s16  ;;  %p1337_p8 = scmp.lt.s32.totalorder %s1335_s26, %s1328_s19 }
  0x92   : > { %p1332_p7 = pneg %p1331_p13 }
  0x93   : > { %p1338_p6 = por %p1337_p8, %p1336_p3 }
  0x95   : > { %p1339_p4 = pnand %p1338_p6, %p1332_p7 }
  0x97   : > { %1342 = shalt.err (!%p1339_p4)
}
  0x98   : > { %s2139_s24 = smov 128   ;;  %p2140_p9 = scmp.ne.s32.totalorder %s2120_s6, 0 }
  0x99   : > { %1092 = dma.hbm_to_vmem [thread:$0]  (!%p1702_p10), %s1710_s0, 1024, %s1820_s20, %s1712_s17, %s2139_s24, %s2136_s3, %s2135_s10  }
  0x9a   : > { %341 = sbr.rel (%p2140_p9) target bundleno = 486 (0x1e6), region = 44  ;;  %s343_s21 = sand.u32 (!%p2140_p9), 1, %s1477_s28  }
  0x9b   : > { %s976_s8 = sshll.u32 (!%p2140_p9), %s343_s21, 4  ;;  %s344_s13 = scalar_lea.sflag (!%p2140_p9), [#allocation5], %s343_s21 }
  0x9c   : > { %s1882_s25 = scalar_lea.vmem (!%p2140_p9), [#allocation4], %s976_s8  ;;  %p2141_p12 = scmp.ne.s32.totalorder (!%p2140_p9), %s2126_s14, 0 }
  0xa1   : > { %1436 = dma.done.wait (%p2141_p12), %s344_s13, 256  }
  0xa2   : > { %1438 = vsyncadd (%p2141_p12), %s344_s13, 4294967040  ;;  %s2142_s5 = sld [smem:[#allocation21_spill]]  ;;  %s2143_s27 = sld [smem:[#allocation15_spill]] }
  0xa3   : > { %s2144_s30 = sld [smem:[#allocation24_spill]] }
  0xa8   : > { %s352_s19 = sand.u32 1, %s2142_s5   ;;  %s354_s0 = sand.u32 1, %s2143_s27  }
  0xa9   : > { %s977_s17 = sshll.u32 %s354_s0, 6  ;;  %s353_s20 = scalar_lea.sflag [#allocation8], %s352_s19 }
  0xaa   : > { %s1890_s6 = scalar_lea.vmem [#allocation7], %s977_s17  ;;  %p2145_p10 = scmp.ne.s32.totalorder %s2144_s30, 0 }
  0xac   : > { %1440 = dma.done.wait (%p2145_p10), %s353_s20, 2048  }
  0xad   : > { %1442 = vsyncadd (%p2145_p10), %s353_s20, 4294965248  ;;  %s2146_s10 = sld [smem:[#allocation17_spill]]  ;;  %s2147_s3 = sld [smem:[#allocation18_spill]] }
  0xae   : > { %s2093_s14 = sand.u32 1, %s1453_s22   ;;  %s2148_s21 = sld [smem:[#allocation31_spill]] }
  0xaf   : > { %s979_s4 = sshll.u32 %s2093_s14, 5  ;;  %s2149_s27 = sld [smem:[#allocation32_spill]] }
  0xb0   : > { %s2150_s20 = sld [smem:[#allocation33_spill]]  ;;  %s1919_s2 = scalar_lea.vmem [#allocation9], %s977_s17 }
  0xb1   : > { %s1921_s15 = scalar_lea.vmem [#allocation10], %s979_s4 }
  0xb3   : > { %p416_p11 = scmp.lt.s32.totalorder %s2146_s10, 3  ;;  %p419_p0 = scmp.lt.s32.totalorder %s2147_s3, 1 }
  0xb4   : > { %p980_p5 = scmp.ne.s32.totalorder %s2146_s10, 0 }
  0xb5   : > { %s1902_s16 = scalar_select %p416_p11, %s2146_s10, 3 }
  0xb6   : > { %s2191_s3 = smov (!%p419_p0, %s2147_s3), 1  ;;  %430 = sbr.rel (%p980_p5) target bundleno = 189 (0xbd), region = 60 }
  0xb7   : > { %s418_s8 = scalar_lea.vmem %s2148_s21, %s1902_s16  ;;  %s421_s30 = scalar_lea.vmem %s2149_s27, %s2191_s3  ;;  %v1518_v0 = vmov (!%p980_p5), 0.0  }
  0xb8   : > { %s424_s14 = scalar_lea.vmem %s2150_s20, %s2191_s3  ;;  %431 = vst [vmem:[#allocation2] sm:$0xff] (!%p980_p5), %v1518_v0  ;;  %432 = vst [vmem:[#allocation2 + $0x8] sm:$0xff] (!%p980_p5), %v1518_v0 }
  0xb9   : > { %433 = vst [vmem:[#allocation2 + $0x10] sm:$0xff] (!%p980_p5), %v1518_v0  ;;  %434 = vst [vmem:[#allocation2 + $0x18] sm:$0xff] (!%p980_p5), %v1518_v0 }
  0xba   : > { %435 = vst [vmem:[#allocation3] sm:$0xff] (!%p980_p5), %v1518_v0  ;;  %436 = vst [vmem:[#allocation3 + $0x8] sm:$0xff] (!%p980_p5), %v1518_v0 }
  0xbb   : > { %437 = vst [vmem:[#allocation3 + $0x10] sm:$0xff] (!%p980_p5), %v1518_v0  ;;  %438 = vst [vmem:[#allocation3 + $0x18] sm:$0xff] (!%p980_p5), %v1518_v0 }
  0xbd PF: > { %v1235_v1 = vld [vmem:[%s1890_s6] sm:$0xff]   ;;  %v1237_v3 = vld [vmem:[%s1890_s6 + $0x8] sm:$0xff]   ;;  %v1239_v5 = vld [vmem:[%s1890_s6 + $0x10] sm:$0xff]   ;;  %v584_v7 = vlaneseq }
  0xbe   : > { %v1236_v2 = vld [vmem:[%s1919_s2] sm:$0xff]   ;;  %1035 = vmatprep.subr.bf16.mxu0 %v1235_v1  ;;  %v1238_v4 = vld [vmem:[%s1919_s2 + $0x8] sm:$0xff]   ;;  %v1240_v6 = vld [vmem:[%s1919_s2 + $0x10] sm:$0xff]  }
  0xbf   : > { %1055 = vmatprep.subr.bf16.mxu1 %v1236_v2  ;;  %1036 = vmatpush3.bf16.msra.mxu0 %v1235_v1  ;;  %v1241_v8 = vld [vmem:[%s1890_s6 + $0x18] sm:$0xff]   ;;  %v585_v10 = vshrl.u32 %v584_v7, 7  ;;  %v1243_v11 = vld [vmem:[%s1890_s6 + $0x20] sm:$0xff]   ;;  %v1245_v13 = vld [vmem:[%s1890_s6 + $0x28] sm:$0xff]  }
  0xc0   : > { %1056 = vmatpush3.bf16.msra.mxu1 %v1236_v2  ;;  %1037 = vmatprep.subr.bf16.mxu0 %v1237_v3  ;;  %v1242_v9 = vld [vmem:[%s1919_s2 + $0x18] sm:$0xff]   ;;  %v1244_v12 = vld [vmem:[%s1919_s2 + $0x20] sm:$0xff]   ;;  %v1246_v18 = vld [vmem:[%s1919_s2 + $0x28] sm:$0xff]  }
  0xc1   : > { %1057 = vmatprep.subr.bf16.mxu1 %v1238_v4  ;;  %v586_v14 = vsub.s32 0, %v585_v10  ;;  %v439_v15 = vld [vmem:[%s1882_s25] sm:$0xf]  ;;  %v440_v16 = vld [vmem:[%s1882_s25 + $0x4] sm:$0xf]  ;;  %v1249_v27 = vld [vmem:[%s1890_s6 + $0x38] sm:$0xff]  }
  0xc2   : > { %v580_v17 = vld [vmem:[%s418_s8] sm:$0x1]  ;;  %v981_v19 = vcombine.low %v439_v15, %v440_v16  ;;  %v1247_v22 = vld [vmem:[%s1890_s6 + $0x30] sm:$0xff]   ;;  %v441_v28 = vld [vmem:[%s1882_s25 + $0x8] sm:$0xf] }
  0xc3   : > { %1038 = vmatpush3.bf16.msra.mxu0 %v1237_v3  ;;  %v582_v20 = vpack.i.b16 %v580_v17, %v580_v17  ;;  %v1248_v23 = vld [vmem:[%s1919_s2 + $0x30] sm:$0xff]   ;;  %v442_v29 = vld [vmem:[%s1882_s25 + $0xc] sm:$0xf]  ;;  %v443_v38 = vld [vmem:[#allocation2] sm:$0xff] }
  0xc4   : > { %1058 = vmatpush3.bf16.msra.mxu1 %v1238_v4  ;;  %1039 = vmatprep.subr.bf16.mxu0 %v1239_v5  ;;  %v1250_v30 = vld [vmem:[%s1919_s2 + $0x38] sm:$0xff]   ;;  %v982_v34 = vcombine.low %v441_v28, %v442_v29  ;;  %v445_v36 = vld [vmem:[#allocation2 + $0x10] sm:$0xff]  ;;  %v596_v40 = vld [vmem:[#allocation3] sm:$0xff]  ;;  %s2152_s2 = sld [smem:[#allocation17_spill]] }
  0xc5   : > { %1059 = vmatprep.subr.bf16.mxu1 %v1240_v6  ;;  %1051 = vmatprep.mubr.bf16.mxu0 %v981_v19  ;;  %v587_v21 = vrot.slane %v582_v20, %v586_v14  ;;  %v598_v37 = vld [vmem:[#allocation3 + $0x10] sm:$0xff]  ;;  %v446_v41 = vld [vmem:[#allocation2 + $0x18] sm:$0xff]  ;;  %v444_v46 = vld [vmem:[#allocation2 + $0x8] sm:$0xff] }
  0xc6   : > { %v599_v45 = vld [vmem:[#allocation3 + $0x18] sm:$0xff]  ;;  %v597_v51 = vld [vmem:[#allocation3 + $0x8] sm:$0xff] }
  0xc7   : > { %1040 = vmatpush3.bf16.msra.mxu0 %v1239_v5  ;;  %v991_v24 = vcombine.low %v587_v21, %v587_v21 }
  0xc8   : > { %1060 = vmatpush3.bf16.msra.mxu1 %v1240_v6  ;;  %1041 = vmatprep.subr.bf16.mxu0 %v1241_v8 }
  0xc9   : > { %1061 = vmatprep.subr.bf16.mxu1 %v1242_v9  ;;  %v592_v25 = vmul.bf16 %v991_v24, %v439_v15  ;;  %v593_v26 = vmul.bf16 %v991_v24, %v440_v16  ;;  %v594_v32 = vmul.bf16 %v991_v24, %v441_v28  ;;  %v595_v33 = vmul.bf16 %v991_v24, %v442_v29 }
  0xca   : > { %p1002_p2 = scmp.ne.s32.totalorder %s2152_s2, 3 }
  0xcb   : > { %1042 = vmatpush3.bf16.msra.mxu0 %v1241_v8  ;;  %v992_v31 = vcombine.low %v592_v25, %v593_v26  ;;  %v993_v35 = vcombine.low %v594_v32, %v595_v33  ;;  %v1003_v62 = vld [vmem:[%s421_s30] ss:$0 sm:$0xff] (!%p1002_p2) }
  0xcc   : > { %1062 = vmatpush3.bf16.msra.mxu1 %v1242_v9  ;;  %1043 = vmatprep.subr.bf16.mxu0 %v1243_v11  ;;  %v1004_v2 = vld [vmem:[%s424_s14] ss:$0 sm:$0xff] (!%p1002_p2) }
  0xcd   : > { %1063 = vmatprep.subr.bf16.mxu1 %v1244_v12  ;;  %1071 = vmatprep.mubr.bf16.mxu1 %v992_v31 }
  0xcf   : > { %1044 = vmatpush3.bf16.msra.mxu0 %v1243_v11 }
  0xd0   : > { %1064 = vmatpush3.bf16.msra.mxu1 %v1244_v12  ;;  %1045 = vmatprep.subr.bf16.mxu0 %v1245_v13 }
  0xd1   : > { %1065 = vmatprep.subr.bf16.mxu1 %v1246_v18 }
  0xd3   : > { %1046 = vmatpush3.bf16.msra.mxu0 %v1245_v13 }
  0xd4   : > { %1066 = vmatpush3.bf16.msra.mxu1 %v1246_v18  ;;  %1047 = vmatprep.subr.bf16.mxu0 %v1247_v22 }
  0xd5   : > { %1067 = vmatprep.subr.bf16.mxu1 %v1248_v23 }
  0xd7   : > { %1048 = vmatpush3.bf16.msra.mxu0 %v1247_v22 }
  0xd8   : > { %1068 = vmatpush3.bf16.msra.mxu1 %v1248_v23  ;;  %1049 = vmatprep.subr.bf16.mxu0 %v1249_v27 }
  0xd9   : > { %1069 = vmatprep.subr.bf16.mxu1 %v1250_v30 }
  0xdb   : > { %1050 = vmatpush3.bf16.msra.mxu0 %v1249_v27 }
  0xdc   : > { %1070 = vmatpush3.bf16.msra.mxu1 %v1250_v30 }
  0xde   : > { %1052 = vmatmul.mubr.bf16.vlgmr.msra.gmra.mrb[0].mxu0 %v982_v34 }
  0xdf   : > { %1072 = vmatmul.mubr.bf16.vlgmr.msra.gmra.mrb[0].mxu1 %v993_v35 }
 0x1b1   : > { %v1053_v39 = vpop.f32.mrb[0].mxu0 }
 0x1b2   : > { %v574_v42 = vadd.f32 %v1053_v39, %v445_v36  ;;  %v1073_v43 = vpop.f32.mrb[0].mxu1  ;;  %v557_v44 = vpop.f32.mrb[1].mxu0  ;;  %736 = sbr.rel (%p1002_p2) target bundleno = 455 (0x1c7), region = 64 }
 0x1b3   : > { %v727_v47 = vadd.f32 %v1073_v43, %v598_v37  ;;  %v572_v48 = vadd.f32 %v557_v44, %v443_v38  ;;  %v710_v49 = vpop.f32.mrb[1].mxu1  ;;  %v1054_v50 = vpop.f32.mrb[2].mxu0 }
 0x1b4   : > { %578 = vst [vmem:[#allocation2 + $0x10] sm:$0xff] %v574_v42  ;;  %v725_v52 = vadd.f32 %v710_v49, %v596_v40  ;;  %v575_v53 = vadd.f32 %v1054_v50, %v446_v41  ;;  %v1074_v54 = vpop.f32.mrb[2].mxu1  ;;  %v560_v55 = vpop.f32.mrb[3].mxu0 }
 0x1b5   : > { %731 = vst [vmem:[#allocation3 + $0x10] sm:$0xff] %v727_v47  ;;  %576 = vst [vmem:[#allocation2] sm:$0xff] %v572_v48  ;;  %v728_v56 = vadd.f32 %v1074_v54, %v599_v45  ;;  %v573_v57 = vadd.f32 %v560_v55, %v444_v46  ;;  %v713_v58 = vpop.f32.mrb[3].mxu1 }
 0x1b6   : > { %729 = vst [vmem:[#allocation3] sm:$0xff] %v725_v52  ;;  %579 = vst [vmem:[#allocation2 + $0x18] sm:$0xff] %v575_v53  ;;  %v726_v59 = vadd.f32 %v713_v58, %v597_v51 }
 0x1b7   : > { %732 = vst [vmem:[#allocation3 + $0x18] sm:$0xff] %v728_v56  ;;  %577 = vst [vmem:[#allocation2 + $0x8] sm:$0xff] %v573_v57 }
 0x1b8   : > { %730 = vst [vmem:[#allocation3 + $0x8] sm:$0xff] %v726_v59 }
 0x1bb   : > { %v739_v4 = vld [vmem:[#allocation2 + $0x10] sm:$0xff] }
 0x1bc   : > { %v737_v60 = vld [vmem:[#allocation2] sm:$0xff]  ;;  %v743_v5 = vld [vmem:[#allocation3 + $0x10] sm:$0xff] }
 0x1bd   : > { %v741_v61 = vld [vmem:[#allocation3] sm:$0xff]  ;;  %v754_v7 = vmul.f32 %v1003_v62, %v743_v5  ;;  %v740_v8 = vld [vmem:[#allocation2 + $0x18] sm:$0xff] }
 0x1be   : > { %v752_v63 = vmul.f32 %v1003_v62, %v741_v61  ;;  %v738_v0 = vld [vmem:[#allocation2 + $0x8] sm:$0xff]  ;;  %v744_v9 = vld [vmem:[#allocation3 + $0x18] sm:$0xff] }
 0x1bf   : > { %v742_v1 = vld [vmem:[#allocation3 + $0x8] sm:$0xff]  ;;  %v755_v11 = vmul.f32 %v1003_v62, %v744_v9  ;;  %v758_v13 = vadd.f32 %v754_v7, %v739_v4 }
 0x1c0   : > { %v753_v3 = vmul.f32 %v1003_v62, %v742_v1  ;;  %v756_v6 = vadd.f32 %v752_v63, %v737_v60 }
 0x1c1   : > { %v759_v15 = vadd.f32 %v755_v11, %v740_v8  ;;  %v769_v16 = vadd.f32 %v1004_v2, %v758_v13 }
 0x1c2   : > { %v757_v10 = vadd.f32 %v753_v3, %v738_v0  ;;  %v767_v12 = vadd.f32 %v1004_v2, %v756_v6 }
 0x1c3   : > { %v770_v17 = vadd.f32 %v1004_v2, %v759_v15  ;;  %773 = vst [vmem:[%s1921_s15 + $0x10] sm:$0xff] %v769_v16 }
 0x1c4   : > { %v768_v14 = vadd.f32 %v1004_v2, %v757_v10  ;;  %771 = vst [vmem:[%s1921_s15] sm:$0xff] %v767_v12 }
 0x1c5   : > { %774 = vst [vmem:[%s1921_s15 + $0x18] sm:$0xff] %v770_v17 }
 0x1c6   : > { %772 = vst [vmem:[%s1921_s15 + $0x8] sm:$0xff] %v768_v14 }
 0x1c7 PF: > { %s2155_s3 = sld [smem:[#allocation19_spill]]  ;;  %s2156_s14 = sld [smem:[#allocation18_spill]] }
 0x1c8   : > { %s2157_s8 = sld [smem:[#allocation27_spill]]  ;;  %s791_s27 = sshll.u32 %s1921_s15, 4  ;;  %s1967_s27 = int_to_ptr.vmem [resolvable:$true] %s791_s27 }
 0x1c9   : > { %s2158_s20 = sld [smem:[#allocation34_spill]]  ;;  %s2159_s10 = sand.u32 1, %s1453_s22  }
 0x1ca   : > { %s1976_s4 = scalar_lea.sflag [#allocation6], %s2159_s10  ;;  %s1343_s2 = scalar_lea.vmem %s1967_s27, 512 }
 0x1cb   : > { %p1344_p1 = scmp.ne.s32.totalorder %s1967_s27, %s1343_s2  ;;  %s1519_s15 = smov [#allocation10]  }
 0x1cc   : > { %s1347_s25 = sshll.u32 %s1519_s15, 4  ;;  %s1348_s25 = int_to_ptr.vmem [resolvable:$false] %s1347_s25 }
 0x1cd   : > { %s1014_s13 = sshll.u32 %s2155_s3, 3  ;;  %s1349_s6 = scalar_lea.vmem %s1348_s25, 1024 }
 0x1ce   : > { %s788_s5 = sadd.s32 %s2156_s14, %s1014_s13  ;;  %p2160_p13 = scmp.ne.s32.totalorder %s2157_s8, 0 }
 0x1cf   : > { %s1008_s30 = sshll.u32 %s788_s5, 7  ;;  %p1350_p8 = scmp.lt.s32.totalorder %s1967_s27, %s1348_s25 }
 0x1d0   : > { %s1972_s17 = scalar_lea.hbm %s2158_s20, %s1008_s30  ;;  %p1345_p7 = pnand %p1344_p1, %p2160_p13 }
 0x1d1   : > { %p1351_p6 = scmp.lt.s32.totalorder %s1349_s6, %s1343_s2 }
 0x1d2   : > { %p1346_p3 = pneg %p1345_p7 }
 0x1d3   : > { %p1352_p4 = por %p1351_p6, %p1350_p8 }
 0x1d5   : > { %p1353_p9 = pnand %p1352_p4, %p1346_p3 }
 0x1d7   : > { %1356 = shalt.err (!%p1353_p9)
}
 0x1d8   : > { %s1357_s16 = scalar_lea.hbm %s1972_s17, 512  ;;  %s1361_s21 = scalar_lea.hbm %s2158_s20, 2048 }
 0x1d9   : > { %p1358_p12 = scmp.ne.s32.totalorder %s1972_s17, %s1357_s16  ;;  %p1362_p0 = scmp.lt.u32.totalorder %s1972_s17, %s2158_s20 }
 0x1da   : > { %p1363_p5 = scmp.lt.u32.totalorder %s1361_s21, %s1357_s16  ;;  %p1365_p1 = scmp.lt.u32.totalorder %s1357_s16, %s1972_s17 }
 0x1db   : > { %p1359_p10 = pnand %p1358_p12, %p2160_p13 }
 0x1dc   : > { %p1364_p2 = por %p1363_p5, %p1362_p0 }
 0x1dd   : > { %p1360_p11 = pneg %p1359_p10 }
 0x1de   : > { %p1366_p7 = por %p1365_p1, %p1364_p2 }
 0x1e0   : > { %p1367_p3 = pnand %p1366_p7, %p1360_p11 }
 0x1e2   : > { %1370 = shalt.err (!%p1367_p3)
}
 0x1e3   : > { %s1520_s13 = smov 128   ;;  %s1521_s5 = smov 256  }
 0x1e4   : > { %s1522_s30 = smov 8  }
 0x1e5   : > { %1081 = dma.vmem_to_hbm [thread:$0]  (%p2160_p13), %s1967_s27, 512, %s1972_s17, %s1976_s4, %s1520_s13, %s1521_s5, %s1522_s30  }
 0x1e6 PF: > { %s2161_s19 = sld [smem:[#allocation14_spill]]  ;;  %p1098_p8 = scmp.ge.s32.totalorder %s1509_s12, 2 }
 0x1e7   : > { %p2162_p6 = scmp.ne.s32.totalorder %s2130_s1, 0 }
 0x1e9   : > { %p1094_p4 = pnand %p1098_p8, %p2162_p6 }
 0x1ec   : > { %s806_s0 = sand.u32 1, %s2161_s19  }
 0x1ed   : > { %s807_s10 = scalar_lea.sflag [#allocation6], %s806_s0 }
 0x1ee   : > { %1444 = dma.done.wait (!%p1094_p4), %s807_s10, 512  }
 0x1ef   : > { %1446 = vsyncadd (!%p1094_p4), %s807_s10, 4294966784  ;;  %s25_s12 = sadd.s32 1, %s1509_s12   ;;  %s2164_s24 = sld [smem:[#allocation15_spill]] }
 0x1f0   : > { %p2005_p9 = scmp.ge.s32.totalorder %s25_s12, 18   ;;  %s2165_s25 = sld [smem:[#allocation16_spill]] }
 0x1f1   : > { %s2166_s26 = sld [smem:[#allocation25_spill]]  ;;  %s2167_s1 = sld [smem:[#allocation20_spill]] }
 0x1f2   : > { %s2168_s17 = sld [smem:[#allocation22_spill]]  ;;  %s2169_s10 = sld [smem:[#allocation23_spill]] }
 0x1f3   : > { %s2170_s4 = sld [smem:[#allocation26_spill]]  ;;  %s2171_s21 = smov %s1453_s22 }
 0x1f4   : > { %s2172_s22 = smov %s1457_s23  ;;  %s2173_s23 = smov %s1795_s18 }
 0x1f5   : > { %s2174_s27 = smov %s1477_s28  ;;  %s2175_s28 = smov %s1481_s29 }
 0x1f6   : > { %s2176_s29 = smov %s1792_s7  ;;  %s2177_s30 = smov %s1497_s9 }
 0x1f7   : > { %s2178_s7 = smov %s2167_s1  ;;  %s2179_s8 = smov %s1505_s11 }
 0x1f8   : > { %s2180_s9 = smov %s2168_s17  ;;  %24 = sbr.rel (!%p2005_p9) target bundleno = 21 (0x15), region = 130 }
 0x1f9   : > { %s2181_s11 = smov %s2170_s4 }
 0x1ff   :  { %812 = vsyncpa [#allocation5], 1 }
 0x200   :  { %814 = vsyncpa [#allocation5 + $0x1], 1 }
 0x201   :  { %815 = vsyncpa [#allocation8], 1 }
 0x202   :  { %817 = vsyncpa [#allocation8 + $0x1], 1 }
 0x203   :  { %818 = vsyncpa [#allocation6], 1 }
 0x204   :  { %820 = vsyncpa [#allocation6 + $0x1], 1 }

</bundles_post_ra>
